<compile_context>
chip_gen: v5e
topology: v5e:2x2
jax: 0.10.0
libtpu: 0.0.40
codegen_flags: <defaults>
</compile_context>

<pallas_src>
import math

import numpy as np
import jax
import jax.numpy as jnp
from jax import lax
from jax.experimental import pallas as pl
from jax.experimental.pallas import tpu as pltpu


def _round_up(x, m):
    return ((x + m - 1) // m) * m


def _build_forward_dft(n, modes, two_m_p):
    """Truncated rfft matrix, (n, two_m_p) = [Re | Im | zero-pad]."""
    k = np.arange(modes)[:, None]          # (M, 1)
    t = np.arange(n)[None, :]              # (1, N)
    ang = 2.0 * np.pi * k * t / n          # (M, N)
    out = np.zeros((n, two_m_p), np.float32)
    out[:, :modes] = np.cos(ang).T         # Re part of X[k] = sum x[n] e^{-i2πkn/N}
    out[:, modes:2 * modes] = (-np.sin(ang)).T
    return out


def _build_inverse_dft(n, modes):
    """(Br, Bi), each (modes, n): irfft contribution of Re/Im of the first `modes`
    bins, with pocketfft/torch semantics (imag of DC / Nyquist bins ignored)."""
    k = np.arange(modes)[:, None]
    t = np.arange(n)[None, :]
    ang = 2.0 * np.pi * k * t / n
    c = np.full((modes,), 2.0, np.float32)
    c[0] = 1.0
    has_nyquist = (n % 2 == 0) and (modes - 1 == n // 2)
    if has_nyquist:
        c[-1] = 1.0
    br = (c[:, None] * np.cos(ang) / n).astype(np.float32)
    bi = (-c[:, None] * np.sin(ang) / n).astype(np.float32)
    bi[0, :] = 0.0
    if has_nyquist:
        bi[-1, :] = 0.0
    return br, bi


def _spectral_conv1d_kernel(x_ref, fwd_ref, wf_ref, o_ref, xf_ref):
    # x_ref:   (Cin, Bt, N)       one channel-major batch block     (dft_dtype)
    # fwd_ref: (N, 2Mp)           truncated rfft matrix [Re | Im]   (dft_dtype)
    # wf_ref:  (Cin, 2Mp, CoutN)  fused (channel mix x inverse rfft)  (float32)
    # o_ref:   (Bt, CoutN)        lane-dense output block, columns (o, n) o-major
    # xf_ref:  (Cin*Bt, 2Mp)      VMEM scratch: spectrum of the block  (float32)
    cin, bt, n = x_ref.shape

    # (1) Truncated rfft of every (channel, batch) row: ONE MXU matmul.
    #     bt % 8 == 0, so the leading-dim merge is a pure re-labelling.
    x2 = x_ref[...].reshape(cin * bt, n)
    xf_ref[...] = jnp.dot(x2, fwd_ref[...], preferred_element_type=jnp.float32)

    # (2)+(3) Complex channel mix fused with the inverse rfft: Cin accumulating
    #         MXU matmuls (a single matmul when Cin == 1).  No VPU broadcasts.
    o_ref[...] = jnp.zeros_like(o_ref)

    def body(i, carry):
        start = pl.multiple_of(i * bt, bt)
        xfi = xf_ref[pl.ds(start, bt), :]                         # (Bt, 2Mp)
        o_ref[...] += jnp.dot(xfi, wf_ref[i],
                              preferred_element_type=jnp.float32)
        return carry

    lax.fori_loop(0, cin, body, 0, unroll=cin <= 8)


def spectral_conv1d(x, weights_re, weights_im, *, block_b=128,
                    dft_dtype=jnp.float32):
    """x: (B, Cin, N) float32; weights_{re,im}: (Cin, Cout, modes) float32."""
    b, c_in, n = x.shape
    c_in_w, c_out, modes = weights_re.shape
    assert c_in_w == c_in
    assert modes <= n // 2 + 1

    itemsize = jnp.dtype(dft_dtype).itemsize
    row_align = 8 * max(1, 4 // itemsize)          # 8 rows for f32, 16 for bf16

    two_m = 2 * modes
    two_m_p = _round_up(two_m, 8)                  # review [2]: NOT 128 per half

    # Lane-dense output columns (Cout_p*N multiple of 128) when the padding is
    # cheap; otherwise leave Cout unpadded (block == full array dim is legal).
    lane_mult = 128 // math.gcd(n, 128)
    c_out_p = _round_up(c_out, lane_mult)
    if c_out_p > 2 * c_out and (c_out_p - c_out) > 32:
        c_out_p = c_out
    out_cols = c_out_p * n

    # --- batch blocking (review [7]) ---------------------------------------
    block_b = max(row_align, _round_up(min(block_b, max(b, row_align)), row_align))
    b_pad = _round_up(b, block_b)
    if b_pad // block_b < 2 and b >= 2 * row_align:
        block_b = max(row_align, _round_up(b_pad // 2, row_align))
        b_pad = _round_up(b, block_b)

    # --- VMEM budget (review [6]) -------------------------------------------
    def _vmem_need(bb):
        x_blk = 2 * c_in * bb * n * itemsize          # double-buffered input
        fwd_b = n * two_m_p * itemsize                # single copy (Buffered(1))
        wf_b = c_in * two_m_p * out_cols * 4          # single copy (Buffered(1))
        out_blk = 2 * bb * out_cols * 4               # double-buffered output
        xf_b = c_in * bb * two_m_p * 4                # scratch spectrum
        return x_blk + fwd_b + wf_b + out_blk + xf_b

    try:
        vmem_cap = int(pltpu.get_tpu_info().vmem_capacity_bytes)
    except Exception:  # pragma: no cover - conservative fallback (v7x size)
        vmem_cap = 64 << 20
    vmem_budget = (vmem_cap * 3) // 4
    while _vmem_need(block_b) > vmem_budget and block_b > row_align:
        block_b = max(row_align, block_b // 2)
    b_pad = _round_up(b, block_b)
    n_blocks = b_pad // block_b
    vmem_limit = int(min(max(2 * _vmem_need(block_b), 32 << 20), vmem_budget))

    # --- host-side constant / fused matrices --------------------------------
    fwd = jnp.asarray(_build_forward_dft(n, modes, two_m_p), dft_dtype)

    br, bi = _build_inverse_dft(n, modes)
    br = jnp.asarray(br)                              # (M, N)
    bi = jnp.asarray(bi)                              # (M, N)
    # Fused (complex channel mix) x (inverse rfft), per input channel (review [1]):
    #   y[b,o,n] = sum_{i,m}  xr[b,i,m] * (wr*Br + wi*Bi)[i,m,o,n]
    #            +            xi[b,i,m] * (wr*Bi - wi*Br)[i,m,o,n]
    wf_re = (jnp.einsum('iom,mn->imon', weights_re, br)
             + jnp.einsum('iom,mn->imon', weights_im, bi))
    wf_im = (jnp.einsum('iom,mn->imon', weights_re, bi)
             - jnp.einsum('iom,mn->imon', weights_im, br))
    wf = jnp.concatenate([wf_re, wf_im], axis=1)                  # (Cin, 2M, Cout, N)
    wf = jnp.pad(wf, ((0, 0), (0, two_m_p - two_m),
                      (0, c_out_p - c_out), (0, 0)))
    wf = wf.reshape(c_in, two_m_p, out_cols).astype(jnp.float32)

    # Channel-major input rows: one HBM pass that buys zero in-kernel relayouts
    # (see header note on review item [4]).  Batch is only padded to block_b.
    x_p = jnp.pad(x, ((0, b_pad - b), (0, 0), (0, 0)))
    x_p = jnp.transpose(x_p, (1, 0, 2)).astype(dft_dtype)         # (Cin, Bp, N)

    # --- specs ----------------------------------------------------------------
    def _const_spec(shape):
        nd = len(shape)

        def zero_map(g):
            return (0,) * nd

        if n_blocks > 1:
            try:
                return pl.BlockSpec(shape, zero_map,
                                    pipeline_mode=pl.Buffered(1))   # review [8]
            except (TypeError, AttributeError):
                pass
        return pl.BlockSpec(shape, zero_map)

    grid_spec = pltpu.PrefetchScalarGridSpec(
        num_scalar_prefetch=0,
        grid=(n_blocks,),
        in_specs=[
            pl.BlockSpec((c_in, block_b, n), lambda g: (0, g, 0)),   # x block
            _const_spec((n, two_m_p)),                               # forward DFT
            _const_spec((c_in, two_m_p, out_cols)),                  # fused weights
        ],
        out_specs=pl.BlockSpec((block_b, out_cols), lambda g: (g, 0)),
        scratch_shapes=[pltpu.VMEM((c_in * block_b, two_m_p), jnp.float32)],
    )

    out = pl.pallas_call(
        _spectral_conv1d_kernel,
        out_shape=jax.ShapeDtypeStruct((b_pad, out_cols), jnp.float32),
        grid_spec=grid_spec,
        compiler_params=pltpu.CompilerParams(
            dimension_semantics=("parallel",),
            vmem_limit_bytes=vmem_limit),
    )(x_p, fwd, wf)

    # (Bp, Cout_p*N) -> (Bp, Cout_p, N) is a free row-major view; the final slice
    # copies only the useful bytes (and is a no-op when nothing was padded).
    out = out.reshape(b_pad, c_out_p, n)
    return out[:b, :c_out, :]


def spectral_conv1d_reference(x, weights_re, weights_im):
    """Pure-JAX reference mirroring the PyTorch SpectralConv1d.forward."""
    b, c_in, n = x.shape
    _, c_out, modes = weights_re.shape
    x_ft = jnp.fft.rfft(x, axis=-1)                                # (B, Cin, N//2+1)
    w = weights_re + 1j * weights_im                               # (Cin, Cout, M)
    out_trunc = jnp.einsum('bix,iox->box', x_ft[:, :, :modes], w)  # (B, Cout, M)
    out_ft = jnp.zeros((b, c_out, n // 2 + 1), dtype=jnp.complex64)
    out_ft = out_ft.at[:, :, :modes].set(out_trunc)
    # pocketfft / torch.fft.irfft semantics: imag of DC / Nyquist bins is ignored.
    out_ft = out_ft.at[:, :, 0].set(jnp.real(out_ft[:, :, 0]))
    if n % 2 == 0:
        out_ft = out_ft.at[:, :, n // 2].set(jnp.real(out_ft[:, :, n // 2]))
    return jnp.fft.irfft(out_ft, n=n, axis=-1).astype(jnp.float32)


if __name__ == "__main__":
    def _run_case(key, batch, c_in, c_out, n, modes):
        kx, kw = jax.random.split(key)
        x = jax.random.normal(kx, (batch, c_in, n), dtype=jnp.float32)
        # weights1 = scale * rand(in, out, modes1, 2) -- deterministic synthetic init.
        scale = 1.0 / (c_in * c_out)
        w = scale * jax.random.uniform(kw, (c_in, c_out, modes, 2), dtype=jnp.float32)
        w_re, w_im = w[..., 0], w[..., 1]

        out = jax.block_until_ready(spectral_conv1d(x, w_re, w_im))
        ref = jax.block_until_ready(spectral_conv1d_reference(x, w_re, w_im))
        assert out.shape == (batch, c_out, n)
        np.testing.assert_allclose(np.asarray(out), np.asarray(ref),
                                   atol=1e-4, rtol=1e-4)

    key = jax.random.PRNGKey(0)
    k1, k2 = jax.random.split(key)
    # Small config consistent with SpectralConv1d(in, out, modes1).
    _run_case(k1, batch=2, c_in=4, c_out=4, n=16, modes=5)
    # First FourierLayer of ResNet9_FNO_medium (in_channels=1), modes at Nyquist.
    _run_case(k2, batch=2, c_in=1, c_out=32, n=16, modes=9)

    print("KERNEL_OK")
</pallas_src>

<mosaic_0001>
module attributes {stable_mosaic.version = 11 : i64} {
  func.func @_spectral_conv1d_kernel(%arg0: i32, %arg1: memref<4x8x16xf32, #tpu.memory_space<vmem>>, %arg2: memref<16x16xf32, #tpu.memory_space<vmem>>, %arg3: memref<4x16x128xf32, #tpu.memory_space<vmem>>, %arg4: memref<8x128xf32, #tpu.memory_space<vmem>>, %arg5: memref<32x16xf32, #tpu.memory_space<vmem>>) attributes {dimension_semantics = [#tpu.dimension_semantics<parallel>], iteration_bounds = array<i64: 1>, scalar_prefetch = 0 : i64, scratch_operands = 1 : i64, tpu.core_type = #tpu.core_type<tc>, window_params = [{transform_indices = @transform_0, window_bounds = array<i64: 4, 8, 16>}, {pipeline_mode = #tpu.pipeline_mode<synchronous>, transform_indices = @transform_1, window_bounds = array<i64: 16, 16>}, {pipeline_mode = #tpu.pipeline_mode<synchronous>, transform_indices = @transform_2, window_bounds = array<i64: 4, 16, 128>}, {transform_indices = @transform_3, window_bounds = array<i64: 8, 128>}]} {
    %c0 = arith.constant 0 : index
    %c0_0 = arith.constant 0 : index
    %c0_1 = arith.constant 0 : index
    %0 = vector.load %arg1[%c0, %c0_0, %c0_1] : memref<4x8x16xf32, #tpu.memory_space<vmem>>, vector<4x8x16xf32>
    %1 = vector.shape_cast %0 : vector<4x8x16xf32> to vector<32x16xf32>
    %c0_2 = arith.constant 0 : index
    %c0_3 = arith.constant 0 : index
    %2 = vector.load %arg2[%c0_2, %c0_3] : memref<16x16xf32, #tpu.memory_space<vmem>>, vector<16x16xf32>
    %cst = arith.constant dense<0.000000e+00> : vector<32x16xf32>
    %3 = tpu.matmul %1, %2, %cst {dimension_numbers = #tpu.dot_dimension_numbers<[1], [0], [0], [1], [0, 0, 1, 1], [], []>} : vector<32x16xf32>, vector<16x16xf32>, vector<32x16xf32> -> vector<32x16xf32>
    %c0_4 = arith.constant 0 : index
    %c0_5 = arith.constant 0 : index
    %4 = vector.load %arg5[%c0_4, %c0_5] : memref<32x16xf32, #tpu.memory_space<vmem>>, vector<32x16xf32>
    tpu.vector_store %arg5[%c0_4, %c0_5], %3 {strides = array<i32>} : memref<32x16xf32, #tpu.memory_space<vmem>>, vector<32x16xf32>,
    %cst_6 = arith.constant 0.000000e+00 : f32
    %5 = vector.broadcast %cst_6 : f32 to vector<8x128xf32>
    %c0_7 = arith.constant 0 : index
    %c0_8 = arith.constant 0 : index
    %6 = vector.load %arg4[%c0_7, %c0_8] : memref<8x128xf32, #tpu.memory_space<vmem>>, vector<8x128xf32>
    tpu.vector_store %arg4[%c0_7, %c0_8], %5 {strides = array<i32>} : memref<8x128xf32, #tpu.memory_space<vmem>>, vector<8x128xf32>,
    %c0_i32 = arith.constant 0 : i32
    %c8_i32 = arith.constant 8 : i32
    %7 = arith.muli %c0_i32, %c8_i32 : i32
    %8 = tpu.assume_multiple %7, 8 : i32
    %9 = arith.index_cast %8 : i32 to index
    %c0_9 = arith.constant 0 : index
    %10 = vector.load %arg5[%9, %c0_9] : memref<32x16xf32, #tpu.memory_space<vmem>>, vector<8x16xf32>
    %c0_10 = arith.constant 0 : index
    %c0_11 = arith.constant 0 : index
    %11 = vector.load %arg4[%c0_10, %c0_11] : memref<8x128xf32, #tpu.memory_space<vmem>>, vector<8x128xf32>
    %12 = arith.index_cast %c0_i32 : i32 to index
    %c0_12 = arith.constant 0 : index
    %c0_13 = arith.constant 0 : index
    %13 = vector.load %arg3[%12, %c0_12, %c0_13] : memref<4x16x128xf32, #tpu.memory_space<vmem>>, vector<1x16x128xf32>
    %14 = vector.shape_cast %13 : vector<1x16x128xf32> to vector<16x128xf32>
    %cst_14 = arith.constant dense<0.000000e+00> : vector<8x128xf32>
    %15 = tpu.matmul %10, %14, %cst_14 {dimension_numbers = #tpu.dot_dimension_numbers<[1], [0], [0], [1], [0, 0, 1, 1], [], []>} : vector<8x16xf32>, vector<16x128xf32>, vector<8x128xf32> -> vector<8x128xf32>
    %16 = arith.addf %11, %15 : vector<8x128xf32>
    %c0_15 = arith.constant 0 : index
    %c0_16 = arith.constant 0 : index
    %17 = vector.load %arg4[%c0_15, %c0_16] : memref<8x128xf32, #tpu.memory_space<vmem>>, vector<8x128xf32>
    tpu.vector_store %arg4[%c0_15, %c0_16], %16 {strides = array<i32>} : memref<8x128xf32, #tpu.memory_space<vmem>>, vector<8x128xf32>,
    %c1_i32 = arith.constant 1 : i32
    %c8_i32_17 = arith.constant 8 : i32
    %18 = arith.muli %c1_i32, %c8_i32_17 : i32
    %19 = tpu.assume_multiple %18, 8 : i32
    %20 = arith.index_cast %19 : i32 to index
    %c0_18 = arith.constant 0 : index
    %21 = vector.load %arg5[%20, %c0_18] : memref<32x16xf32, #tpu.memory_space<vmem>>, vector<8x16xf32>
    %c0_19 = arith.constant 0 : index
    %c0_20 = arith.constant 0 : index
    %22 = vector.load %arg4[%c0_19, %c0_20] : memref<8x128xf32, #tpu.memory_space<vmem>>, vector<8x128xf32>
    %23 = arith.index_cast %c1_i32 : i32 to index
    %c0_21 = arith.constant 0 : index
    %c0_22 = arith.constant 0 : index
    %24 = vector.load %arg3[%23, %c0_21, %c0_22] : memref<4x16x128xf32, #tpu.memory_space<vmem>>, vector<1x16x128xf32>
    %25 = vector.shape_cast %24 : vector<1x16x128xf32> to vector<16x128xf32>
    %cst_23 = arith.constant dense<0.000000e+00> : vector<8x128xf32>
    %26 = tpu.matmul %21, %25, %cst_23 {dimension_numbers = #tpu.dot_dimension_numbers<[1], [0], [0], [1], [0, 0, 1, 1], [], []>} : vector<8x16xf32>, vector<16x128xf32>, vector<8x128xf32> -> vector<8x128xf32>
    %27 = arith.addf %22, %26 : vector<8x128xf32>
    %c0_24 = arith.constant 0 : index
    %c0_25 = arith.constant 0 : index
    %28 = vector.load %arg4[%c0_24, %c0_25] : memref<8x128xf32, #tpu.memory_space<vmem>>, vector<8x128xf32>
    tpu.vector_store %arg4[%c0_24, %c0_25], %27 {strides = array<i32>} : memref<8x128xf32, #tpu.memory_space<vmem>>, vector<8x128xf32>,
    %c2_i32 = arith.constant 2 : i32
    %c8_i32_26 = arith.constant 8 : i32
    %29 = arith.muli %c2_i32, %c8_i32_26 : i32
    %30 = tpu.assume_multiple %29, 8 : i32
    %31 = arith.index_cast %30 : i32 to index
    %c0_27 = arith.constant 0 : index
    %32 = vector.load %arg5[%31, %c0_27] : memref<32x16xf32, #tpu.memory_space<vmem>>, vector<8x16xf32>
    %c0_28 = arith.constant 0 : index
    %c0_29 = arith.constant 0 : index
    %33 = vector.load %arg4[%c0_28, %c0_29] : memref<8x128xf32, #tpu.memory_space<vmem>>, vector<8x128xf32>
    %34 = arith.index_cast %c2_i32 : i32 to index
    %c0_30 = arith.constant 0 : index
    %c0_31 = arith.constant 0 : index
    %35 = vector.load %arg3[%34, %c0_30, %c0_31] : memref<4x16x128xf32, #tpu.memory_space<vmem>>, vector<1x16x128xf32>
    %36 = vector.shape_cast %35 : vector<1x16x128xf32> to vector<16x128xf32>
    %cst_32 = arith.constant dense<0.000000e+00> : vector<8x128xf32>
    %37 = tpu.matmul %32, %36, %cst_32 {dimension_numbers = #tpu.dot_dimension_numbers<[1], [0], [0], [1], [0, 0, 1, 1], [], []>} : vector<8x16xf32>, vector<16x128xf32>, vector<8x128xf32> -> vector<8x128xf32>
    %38 = arith.addf %33, %37 : vector<8x128xf32>
    %c0_33 = arith.constant 0 : index
    %c0_34 = arith.constant 0 : index
    %39 = vector.load %arg4[%c0_33, %c0_34] : memref<8x128xf32, #tpu.memory_space<vmem>>, vector<8x128xf32>
    tpu.vector_store %arg4[%c0_33, %c0_34], %38 {strides = array<i32>} : memref<8x128xf32, #tpu.memory_space<vmem>>, vector<8x128xf32>,
    %c3_i32 = arith.constant 3 : i32
    %c8_i32_35 = arith.constant 8 : i32
    %40 = arith.muli %c3_i32, %c8_i32_35 : i32
    %41 = tpu.assume_multiple %40, 8 : i32
    %42 = arith.index_cast %41 : i32 to index
    %c0_36 = arith.constant 0 : index
    %43 = vector.load %arg5[%42, %c0_36] : memref<32x16xf32, #tpu.memory_space<vmem>>, vector<8x16xf32>
    %c0_37 = arith.constant 0 : index
    %c0_38 = arith.constant 0 : index
    %44 = vector.load %arg4[%c0_37, %c0_38] : memref<8x128xf32, #tpu.memory_space<vmem>>, vector<8x128xf32>
    %45 = arith.index_cast %c3_i32 : i32 to index
    %c0_39 = arith.constant 0 : index
    %c0_40 = arith.constant 0 : index
    %46 = vector.load %arg3[%45, %c0_39, %c0_40] : memref<4x16x128xf32, #tpu.memory_space<vmem>>, vector<1x16x128xf32>
    %47 = vector.shape_cast %46 : vector<1x16x128xf32> to vector<16x128xf32>
    %cst_41 = arith.constant dense<0.000000e+00> : vector<8x128xf32>
    %48 = tpu.matmul %43, %47, %cst_41 {dimension_numbers = #tpu.dot_dimension_numbers<[1], [0], [0], [1], [0, 0, 1, 1], [], []>} : vector<8x16xf32>, vector<16x128xf32>, vector<8x128xf32> -> vector<8x128xf32>
    %49 = arith.addf %44, %48 : vector<8x128xf32>
    %c0_42 = arith.constant 0 : index
    %c0_43 = arith.constant 0 : index
    %50 = vector.load %arg4[%c0_42, %c0_43] : memref<8x128xf32, #tpu.memory_space<vmem>>, vector<8x128xf32>
    tpu.vector_store %arg4[%c0_42, %c0_43], %49 {strides = array<i32>} : memref<8x128xf32, #tpu.memory_space<vmem>>, vector<8x128xf32>,
    %c4_i32 = arith.constant 4 : i32
    return
  }
  func.func @transform_0(%arg0: i32) -> (i32, i32, i32) {
    %c0_i32 = arith.constant 0 : i32
    %c0_i32_0 = arith.constant 0 : i32
    %c0_i32_1 = arith.constant 0 : i32
    return %c0_i32, %arg0, %c0_i32_0 : i32, i32, i32
  }
  func.func @transform_1(%arg0: i32) -> (i32, i32) {
    %c0_i32 = arith.constant 0 : i32
    %c0_i32_0 = arith.constant 0 : i32
    %c0_i32_1 = arith.constant 0 : i32
    return %c0_i32, %c0_i32_0 : i32, i32
  }
  func.func @transform_2(%arg0: i32) -> (i32, i32, i32) {
    %c0_i32 = arith.constant 0 : i32
    %c0_i32_0 = arith.constant 0 : i32
    %c0_i32_1 = arith.constant 0 : i32
    %c0_i32_2 = arith.constant 0 : i32
    return %c0_i32, %c0_i32_0, %c0_i32_1 : i32, i32, i32
  }
  func.func @transform_3(%arg0: i32) -> (i32, i32) {
    %c0_i32 = arith.constant 0 : i32
    %c0_i32_0 = arith.constant 0 : i32
    return %arg0, %c0_i32 : i32, i32
  }
}

</mosaic_0001>

<bundles_post_ra>
// kernel: tpu_custom_call.1
= control target key start
LH: loop header
LB: loop body
LE: loop exit
PB: predicated region body
PF: predicated region fallthrough
CT: control target
= control target key end

     0   :  { %8 = vsyncpa [#allocation4], 0  ;;  %s426_s0 = inlined_call_operand.hbm [shape: f32[4,8,16], index: 0, kind: input, shape index: {}]   ;;  %s427_s1 = inlined_call_operand.hbm [shape: f32[16,16], index: 1, kind: input, shape index: {}]   ;;  %s428_s2 = inlined_call_operand.hbm [shape: f32[4,16,128], index: 2, kind: input, shape index: {}]   ;;  %s429_s3 = inlined_call_operand.hbm [shape: f32[8,128], index: 3, kind: output, shape index: {}]  }
   0x1   :  { %9 = vsyncpa [#allocation7], 0 }
   0x2   :  { %10 = vsyncpa [#allocation5], 0  ;;  %s28_s14 = sshll.u32 %s427_s1, 4  ;;  %s376_s15 = smov [#allocation6]   ;;  %s29_s14 = int_to_ptr.hbm [resolvable:$true] %s28_s14 }
   0x3   :  { %s30_s16 = sshll.u32 %s376_s15, 4  ;;  %s15_s19 = sshll.u32 %s426_s0, 4  ;;  %s31_s16 = int_to_ptr.vmem [resolvable:$true] %s30_s16  ;;  %s16_s19 = int_to_ptr.hbm [resolvable:$true] %s15_s19 }
   0x4   :  { %s377_s20 = smov 128   ;;  %s378_s21 = smov 8  }
   0x5   :  { %36 = dma.hbm_to_vmem [thread:$0]  %s29_s14, 256, %s31_s16, [#allocation7], %s377_s20, %s377_s20, %s378_s21  }
   0x6   :  { %s379_s22 = smov [#allocation3]   ;;  %s41_s26 = sshll.u32 %s428_s2, 4  ;;  %s42_s26 = int_to_ptr.hbm [resolvable:$true] %s41_s26 }
   0x7   :  { %s17_s23 = sshll.u32 %s379_s22, 4  ;;  %s380_s1 = smov [#allocation8]   ;;  %s18_s23 = int_to_ptr.vmem [resolvable:$true] %s17_s23 }
   0x8   :  { %23 = dma.hbm_to_vmem [thread:$0]  %s16_s19, 512, %s18_s23, [#allocation4], %s377_s20, %s377_s20, %s378_s21  }
   0x9   :  { %s43_s27 = sshll.u32 %s380_s1, 4  ;;  %s44_s27 = int_to_ptr.vmem [resolvable:$true] %s43_s27 }
   0xa   :  { %49 = dma.hbm_to_vmem [thread:$0]  %s42_s26, 1024, %s44_s27, [#allocation7], %s377_s20, %s377_s20, %s378_s21  }
   0xb   :  { %370 = dma.done.wait [#allocation4], 512  }
   0xc   :  { %371 = vsyncadd [#allocation4], 4294966784 }
   0xd   :  { %372 = dma.done.wait [#allocation7], 1280  }
   0xe   :  { %373 = vsyncadd [#allocation7], 4294966016  ;;  %v67_v0 = vld [vmem:[#allocation6 + $0x8] sm:$0xff]  ;;  %v66_v1 = vld [vmem:[#allocation6] sm:$0xff]  ;;  %vm68_vm0 = vcmask 130048   ;;  %s381_s0 = smov [#allocation9]  }
   0xf   :  { %95 = vmatpush.msra.mxu0 %v67_v0  ;;  %v62_v2 = vld [vmem:[#allocation3] sm:$0xff]  ;;  %263 = vmatpush.msra.mxu2 %v67_v0  ;;  %v64_v3 = vld [vmem:[#allocation3 + $0x10] sm:$0xff]  ;;  %v65_v4 = vld [vmem:[#allocation3 + $0x18] sm:$0xff]  ;;  %s242_s2 = sshll.u32 %s381_s0, 4  ;;  %s244_s30 = sshll.u32 %s429_s3, 4  ;;  %s243_s2 = int_to_ptr.vmem [resolvable:$true] %s242_s2  ;;  %s245_s30 = int_to_ptr.hbm [resolvable:$true] %s244_s30 }
  0x10   :  { %264 = vmatpush.msra.mxu3 %v67_v0  ;;  %v63_v5 = vld [vmem:[#allocation3 + $0x8] sm:$0xff]  ;;  %v118_v6 = vld [vmem:[#allocation8 + $0x8] sm:$0xff]  ;;  %v117_v7 = vld [vmem:[#allocation8] sm:$0xff] }
  0x11   :  { %96 = vmatpush.msra.mxu0 %v66_v1  ;;  %265 = vmatpush.msra.mxu2 %v66_v1  ;;  %v149_v8 = vld [vmem:[#allocation8 + $0x18] sm:$0xff]  ;;  %v148_v9 = vld [vmem:[#allocation8 + $0x10] sm:$0xff]  ;;  %v180_v10 = vld [vmem:[#allocation8 + $0x28] sm:$0xff] }
  0x12   :  { %255 = vmatmul.msk.f32.vlgmr.msra.gmra.mxu0 %vm68_vm0, %v62_v2  ;;  %257 = vmatmul.msk.f32.vlgmr.msra.gmra.mxu2 %vm68_vm0, %v64_v3  ;;  %v179_v11 = vld [vmem:[#allocation8 + $0x20] sm:$0xff]  ;;  %v211_v12 = vld [vmem:[#allocation8 + $0x38] sm:$0xff]  ;;  %v210_v13 = vld [vmem:[#allocation8 + $0x30] sm:$0xff] }
  0x13   :  { %266 = vmatpush.msra.mxu3 %v66_v1  ;;  %136 = vmatpush.msra.mxu1 %v118_v6 }
  0x14   :  { %258 = vmatmul.msk.f32.vlgmr.msra.gmra.mxu3 %vm68_vm0, %v65_v4  ;;  %167 = vmatpush.msrb.mxu2 %v149_v8 }
  0x15   :  { %137 = vmatpush.msra.mxu1 %v117_v7  ;;  %198 = vmatpush.msrb.mxu3 %v180_v10 }
  0x16   :  { %168 = vmatpush.msrb.mxu2 %v148_v9 }
  0x17   :  { %199 = vmatpush.msrb.mxu3 %v179_v11  ;;  %229 = vmatpush.msrb.mxu1 %v211_v12 }
  0x19   :  { %230 = vmatpush.msrb.mxu1 %v210_v13 }
  0x1a   :  { %256 = vmatmul.msk.f32.gmra.mxu0 %vm68_vm0, %v63_v5 }
  0x8f   :  { %v98_v14 = vpop.f32.mrf.mxu0 }
  0x90   :  { %110 = vst.msk [vmem:[#allocation2] sm:$0xff] %vm68_vm0, %v98_v14 }
  0x95   :  { %v104_v15 = vpop.f32.mrf.mxu2 }
  0x96   :  { %112 = vst.msk [vmem:[#allocation2 + $0x10] sm:$0xff] %vm68_vm0, %v104_v15 }
  0x97   :  { %v101_v16 = vpop.f32.mrf.mxu0  ;;  %v115_v17 = vld [vmem:[#allocation2] sm:$0xff]  ;;  %v107_v18 = vpop.f32.mrf.mxu3 }
  0x98   :  { %111 = vst.msk [vmem:[#allocation2 + $0x8] sm:$0xff] %vm68_vm0, %v101_v16  ;;  %259 = vmatmul.msk.f32.vlgmr.msra.gmra.mxu1 %vm68_vm0, %v115_v17 }
  0x99   :  { %113 = vst.msk [vmem:[#allocation2 + $0x18] sm:$0xff] %vm68_vm0, %v107_v18 }
  0x9d   :  { %v176_v19 = vld [vmem:[#allocation2 + $0x10] sm:$0xff] }
  0x9e   :  { %261 = vmatmul.msk.f32.vlgmr.msrb.gmra.mxu3 %vm68_vm0, %v176_v19 }
  0x9f   :  { %v145_v20 = vld [vmem:[#allocation2 + $0x8] sm:$0xff] }
  0xa0   :  { %260 = vmatmul.msk.f32.vlgmr.msrb.gmra.mxu2 %vm68_vm0, %v145_v20  ;;  %v207_v21 = vld [vmem:[#allocation2 + $0x18] sm:$0xff] }
  0xa1   :  { %262 = vmatmul.msk.f32.vlgmr.msrb.gmra.mxu1 %vm68_vm0, %v207_v21 }
 0x115   :  { %v139_v22 = vpop.f32.mrf.mxu1 }
 0x11e   :  { %v232_v26 = vpop.f32.mrf.mxu1 }
 0x121   :  { %v201_v24 = vpop.f32.mrf.mxu3 }
 0x123   :  { %v170_v23 = vpop.f32.mrf.mxu2 }
 0x124   :  { %v173_v25 = vadd.f32 %v170_v23, %v139_v22 }
 0x126   :  { %v204_v27 = vadd.f32 %v201_v24, %v173_v25 }
 0x128   :  { %v235_v28 = vadd.f32 %v232_v26, %v204_v27 }
 0x12a   :  { %236 = vst [vmem:[#allocation9] sm:$0xff] %v235_v28 }
 0x12b   :  { %247 = dma.vmem_to_hbm [thread:$0]  %s243_s2, 128, %s245_s30, [#allocation5]  }
 0x12c   :  { %374 = dma.done.wait [#allocation5], 128  }
 0x12d   :  { %375 = vsyncadd [#allocation5], 4294967168 }
 0x12e   :  { %252 = vsyncpa [#allocation4], 1 }
 0x12f   :  { %253 = vsyncpa [#allocation7], 1 }
 0x130   :  { %254 = vsyncpa [#allocation5], 1 }

</bundles_post_ra>
